<compile_context>
chip_gen: v7x
topology: tpu7x:2x2x1
jax: 0.10.0
libtpu: 0.0.40
codegen_flags: <defaults>
</compile_context>

<pallas_src>
import functools

import jax
import jax.numpy as jnp
from jax.experimental import pallas as pl
from jax.experimental.pallas import tpu as pltpu

ENTROPIC_SCALE = 10.0


def _round_up(x, m):
    return ((x + m - 1) // m) * m


def _pick_row_tile(n, block_n):
    """Row tile: multiple of 8 (or == n); prefer >=2 row blocks for dual-TC."""
    if n <= 8:
        return n
    tn = min(block_n, _round_up((n + 1) // 2, 8))
    tn = min(tn, n)
    if tn < n:
        tn = max(8, (tn // 8) * 8)
    return tn


def _lse_single_block_kernel(logits_ref, lse_ref):
    """Per-row logsumexp(scale * x) when the whole class axis fits one tile.

    grid = (row_blocks,)   logits_ref: [TN, C]   lse_ref: [TN, 1] f32
    """
    xr = logits_ref[...]                                       # native dtype
    m = jnp.max(xr, axis=1, keepdims=True).astype(jnp.float32)  # [TN, 1]
    x = xr.astype(jnp.float32)
    e = jnp.exp(ENTROPIC_SCALE * (x - m))
    s = jnp.sum(e, axis=1, keepdims=True)
    lse_ref[...] = ENTROPIC_SCALE * m + jnp.log(s)


def _lse_online_kernel(logits_ref, lse_ref, m_scr, l_scr, *, num_classes,
                       masked):
    """Online per-row logsumexp over class tiles.

    grid = (row_blocks [parallel], class_blocks [arbitrary reduction])
      logits_ref: [TN, TC]   lse_ref: [TN, 1] f32 (written at last class step)
      m_scr/l_scr: [TN, 1] f32 running max / running sum-exp
    `masked` is a static flag, only True when TC does not divide num_classes.
    """
    j = pl.program_id(1)

    @pl.when(j == 0)
    def _init():
        m_scr[...] = jnp.full(m_scr.shape, -jnp.inf, dtype=jnp.float32)
        l_scr[...] = jnp.zeros(l_scr.shape, dtype=jnp.float32)

    xr = logits_ref[...]                                       # [TN, TC]
    tn, tc = xr.shape

    if masked:  # static: only compiled for a ragged class tiling
        col = j * tc + jax.lax.broadcasted_iota(jnp.int32, xr.shape, 1)
        xr = jnp.where(col < num_classes, xr, jnp.asarray(-1e30, xr.dtype))

    m_prev = m_scr[...]                                        # [TN, 1]
    blk_max = jnp.max(xr, axis=1, keepdims=True).astype(jnp.float32)
    m_new = jnp.maximum(m_prev, blk_max)
    alpha = jnp.exp(ENTROPIC_SCALE * (m_prev - m_new))         # 0 on 1st step

    x = xr.astype(jnp.float32)
    e = jnp.exp(ENTROPIC_SCALE * (x - m_new))
    l_scr[...] = alpha * l_scr[...] + jnp.sum(e, axis=1, keepdims=True)
    m_scr[...] = m_new

    @pl.when(j == pl.num_programs(1) - 1)
    def _finalize():
        lse_ref[...] = ENTROPIC_SCALE * m_scr[...] + jnp.log(l_scr[...])


def isomax_loss_second_part(logits, targets, *, block_n=512, block_c=4096):
    """logits: [N, C] float, targets: [N] int. Returns scalar f32 loss."""
    n, c = logits.shape

    # Tiny JAX-side gather of the raw logit at the target class.
    tgt = targets.astype(jnp.int32).reshape(n, 1)
    tgt_logit = jnp.take_along_axis(logits, tgt, axis=1).astype(jnp.float32)
    tgt_logit = tgt_logit[:, 0]                                # [N] f32

    tn = _pick_row_tile(n, block_n)
    num_row_blocks = pl.cdiv(n, tn)
    out_rows = num_row_blocks * tn

    if c <= block_c:
        tc, num_col_blocks = c, 1
    else:
        tc = max(128, (block_c // 128) * 128)                  # lane-dense tile
        num_col_blocks = pl.cdiv(c, tc)

    tile_bytes = tn * tc * logits.dtype.itemsize
    vmem_limit_bytes = int(max(32 * 2**20,
                               min(4 * tile_bytes + (2 << 20), 96 * 2**20)))

    cost = pl.CostEstimate(
        flops=5 * n * c,
        transcendentals=n * c,
        bytes_accessed=n * c * logits.dtype.itemsize + out_rows * 4)

    out_shape = jax.ShapeDtypeStruct((out_rows, 1), jnp.float32)

    if num_col_blocks == 1:
        lse = pl.pallas_call(
            _lse_single_block_kernel,
            out_shape=out_shape,
            grid_spec=pltpu.PrefetchScalarGridSpec(
                num_scalar_prefetch=0,
                grid=(num_row_blocks,),
                in_specs=[pl.BlockSpec((tn, tc), lambda i: (i, 0))],
                out_specs=pl.BlockSpec((tn, 1), lambda i: (i, 0)),
            ),
            compiler_params=pltpu.CompilerParams(
                dimension_semantics=("parallel",),
                vmem_limit_bytes=vmem_limit_bytes),
            cost_estimate=cost,
        )(logits)
    else:
        kernel = functools.partial(_lse_online_kernel,
                                   num_classes=c,
                                   masked=(c % tc != 0))
        lse = pl.pallas_call(
            kernel,
            out_shape=out_shape,
            grid_spec=pltpu.PrefetchScalarGridSpec(
                num_scalar_prefetch=0,
                grid=(num_row_blocks, num_col_blocks),
                in_specs=[pl.BlockSpec((tn, tc), lambda i, j: (i, j))],
                out_specs=pl.BlockSpec((tn, 1), lambda i, j: (i, 0)),
                scratch_shapes=[pltpu.VMEM((tn, 1), jnp.float32),  # running max
                                pltpu.VMEM((tn, 1), jnp.float32)],  # running sum
            ),
            compiler_params=pltpu.CompilerParams(
                dimension_semantics=("parallel", "arbitrary"),
                vmem_limit_bytes=vmem_limit_bytes),
            cost_estimate=cost,
        )(logits)

    # Drop ragged-row garbage by slicing (a select, never arithmetic masking).
    lse_rows = lse[:n, 0]                                      # [N] f32
    nll = lse_rows - ENTROPIC_SCALE * tgt_logit
    return jnp.mean(nll)


def _reference_loss(logits, targets):
    scaled = ENTROPIC_SCALE * logits.astype(jnp.float32)
    logp = jax.nn.log_softmax(scaled, axis=1)
    p_at_t = logp[jnp.arange(logits.shape[0]), targets]
    return -jnp.mean(p_at_t)


if __name__ == "__main__":
    key = jax.random.PRNGKey(0)
    k1, k2, k3, k4 = jax.random.split(key, 4)

    # Case 1: single class block, single row block (common classification shape).
    N, C = 8, 32
    logits = jax.random.normal(k1, (N, C), dtype=jnp.float32)
    targets = jax.random.randint(k2, (N,), 0, C, dtype=jnp.int32)
    loss = jax.block_until_ready(isomax_loss_second_part(logits, targets))
    ref = jax.block_until_ready(_reference_loss(logits, targets))
    assert jnp.allclose(loss, ref, atol=1e-4, rtol=1e-4), (loss, ref)

    # Case 2: ragged row blocks + multi class block (online logsumexp + mask).
    N2, C2 = 13, 200
    logits2 = jax.random.normal(k3, (N2, C2), dtype=jnp.float32)
    targets2 = jax.random.randint(k4, (N2,), 0, C2, dtype=jnp.int32)
    loss2 = jax.block_until_ready(
        isomax_loss_second_part(logits2, targets2, block_n=8, block_c=128))
    ref2 = jax.block_until_ready(_reference_loss(logits2, targets2))
    assert jnp.allclose(loss2, ref2, atol=1e-4, rtol=1e-4), (loss2, ref2)

    print("KERNEL_OK")
</pallas_src>

<mosaic_0001>
module attributes {stable_mosaic.version = 11 : i64} {
  func.func @_lse_single_block_kernel(%arg0: i32, %arg1: memref<8x32xf32, #tpu.memory_space<vmem>>, %arg2: memref<8x1xf32, #tpu.memory_space<vmem>>) attributes {dimension_semantics = [#tpu.dimension_semantics<parallel>], iteration_bounds = array<i64: 1>, scalar_prefetch = 0 : i64, scratch_operands = 0 : i64, tpu.core_type = #tpu.core_type<tc>, window_params = [{transform_indices = @transform_0, window_bounds = array<i64: 8, 32>}, {transform_indices = @transform_1, window_bounds = array<i64: 8, 1>}]} {
    %c0 = arith.constant 0 : index
    %c0_0 = arith.constant 0 : index
    %0 = vector.load %arg1[%c0, %c0_0] : memref<8x32xf32, #tpu.memory_space<vmem>>, vector<8x32xf32>
    %cst = arith.constant dense<0xFF800000> : vector<8xf32>
    %1 = vector.multi_reduction <maximumf>, %0, %cst [1] : vector<8x32xf32> to vector<8xf32>
    %2 = vector.shape_cast %1 : vector<8xf32> to vector<8x1xf32>
    %3 = vector.broadcast %2 : vector<8x1xf32> to vector<8x32xf32>
    %4 = arith.subf %0, %3 : vector<8x32xf32>
    %cst_1 = arith.constant 1.000000e+01 : f32
    %5 = vector.broadcast %cst_1 : f32 to vector<8x32xf32>
    %6 = arith.mulf %5, %4 : vector<8x32xf32>
    %7 = math.exp %6 : vector<8x32xf32>
    %cst_2 = arith.constant dense<0.000000e+00> : vector<8xf32>
    %8 = vector.multi_reduction <add>, %7, %cst_2 [1] : vector<8x32xf32> to vector<8xf32>
    %9 = vector.shape_cast %8 : vector<8xf32> to vector<8x1xf32>
    %cst_3 = arith.constant 1.000000e+01 : f32
    %10 = vector.broadcast %cst_3 : f32 to vector<8x1xf32>
    %11 = arith.mulf %10, %2 : vector<8x1xf32>
    %12 = math.log %9 : vector<8x1xf32>
    %13 = arith.addf %11, %12 : vector<8x1xf32>
    %c0_4 = arith.constant 0 : index
    %c0_5 = arith.constant 0 : index
    %14 = vector.load %arg2[%c0_4, %c0_5] : memref<8x1xf32, #tpu.memory_space<vmem>>, vector<8x1xf32>
    tpu.vector_store %arg2[%c0_4, %c0_5], %13 {strides = array<i32>} : memref<8x1xf32, #tpu.memory_space<vmem>>, vector<8x1xf32>,
    return
  }
  func.func @transform_0(%arg0: i32) -> (i32, i32) {
    %c0_i32 = arith.constant 0 : i32
    %c0_i32_0 = arith.constant 0 : i32
    return %arg0, %c0_i32 : i32, i32
  }
  func.func @transform_1(%arg0: i32) -> (i32, i32) {
    %c0_i32 = arith.constant 0 : i32
    %c0_i32_0 = arith.constant 0 : i32
    return %arg0, %c0_i32 : i32, i32
  }
}

</mosaic_0001>

<bundles_post_ra>
// kernel: tpu_custom_call.1
= control target key start
LH: loop header
LB: loop body
LE: loop exit
PB: predicated region body
PF: predicated region fallthrough
CT: control target
= control target key end

     0   :  { %6 = vsyncpa [#allocation3], 0  ;;  %s72_s6 = smov [#allocation2]   ;;  %s98_s0 = inlined_call_operand.hbm [shape: f32[8,32], index: 0, kind: input, shape index: {}]   ;;  %s99_s1 = inlined_call_operand.vmem [shape: f32[8,1], index: 1, kind: output, shape index: {}]  }
   0x1   :  { %s13_s7 = sshll.u32 %s72_s6, 4  ;;  %s48_s10 = scalar_lea.hbm %s98_s0, 128  ;;  %s14_s7 = int_to_ptr.vmem [resolvable:$true] %s13_s7 }
   0x2   :  { %p49_p0 = scmp.ne.s32.totalorder %s98_s0, %s48_s10  ;;  %p52_p1 = scmp.lt.u32.totalorder %s48_s10, %s98_s0 }
   0x4   :  { %p54_p2 = pnand %p52_p1, %p49_p0 }
   0x6   :  { %57 = shalt.err (!%p54_p2)
}
   0x7   :  { %s58_s15 = scalar_lea.vmem %s14_s7, 128  ;;  %p63_p4 = scmp.lt.s32.totalorder %s14_s7, %s14_s7 }
   0x8   :  { %p59_p3 = scmp.ne.s32.totalorder %s14_s7, %s58_s15  ;;  %p64_p5 = scmp.lt.s32.totalorder %s58_s15, %s58_s15 }
   0xa   :  { %p65_p6 = por %p64_p5, %p63_p4 }
   0xc   :  { %p66_p7 = pnand %p65_p6, %p59_p3 }
   0xe   :  { %69 = shalt.err (!%p66_p7)
}
   0xf   :  { %16 = dma.hbm_to_vmem [thread:$0]  %s98_s0, 128, %s14_s7, [#allocation3]  }
  0x10   :  { %70 = dma.done.wait [#allocation3], 128  }
  0x11   :  { %71 = vsyncadd [#allocation3], 4294967168  ;;  %vm21_vm0 = vcmask 261120   ;;  %v20_v0 = vld [vmem:[#allocation2] sm:$0xff]  ;;  %vm36_vm1 = vcmask 7168  }
  0x12   :  { %v22_v1 = vsel %vm21_vm0, %v20_v0, -inf }
  0x13   :  { %23 = vmax.xlane.f32.xlu0 %v22_v1 }
  0xa0   :  { %v24_v2 = vpop.xlane.xlu0 %23 }
  0xa1   :  { %v25_v3 = vsub.f32 %v20_v0, %v24_v2  ;;  %v32_v10 = vmul.f32 10.0, %v24_v2 }
  0xa3   :  { %v26_v4 = vmul.f32 10.0, %v25_v3 }
  0xa5   :  { %v27_v5 = vmul.f32 1.442695, %v26_v4 }
  0xa7   :  { %44 = vpow2.f32 %v27_v5 }
  0xb1   :  { %v45_v6 = vpop.eup %44 }
  0xb2   :  { %v29_v7 = vsel %vm21_vm0, %v45_v6, 0.0 }
  0xb3   :  { %30 = vadd.xlane.f32.xlu0 %v29_v7 }
 0x140   :  { %v31_v8 = vpop.xlane.xlu0 %30 }
 0x141   :  { %46 = vlog2.f32 %v31_v8 }
 0x14b   :  { %v47_v9 = vpop.eup %46 }
 0x14c   :  { %v34_v11 = vmul.f32 0.6931472, %v47_v9 }
 0x14e   :  { %v35_v12 = vadd.f32 %v34_v11, %v32_v10 }
 0x150   :  { %37 = vst.msk [vmem:[%s99_s1] sm:$0xff] %vm36_vm1, %v35_v12 }
 0x151   :  { %42 = vsyncpa [#allocation3], 1 }

</bundles_post_ra>
